<compile_context>
chip_gen: v7x
topology: tpu7x:2x2x1
jax: 0.10.0
libtpu: 0.0.40
codegen_flags: <defaults>
</compile_context>

<pallas_src>
import functools

import jax
import jax.numpy as jnp
from jax.experimental import pallas as pl
from jax.experimental.pallas import tpu as pltpu

_LANES = 128
_SUBLANES = 8


def _vfl_partial_kernel(pred_ref, gt_ref, label_ref, out_ref, *, alpha, gamma):
    x = pred_ref[...].astype(jnp.float32)      # logits
    z = gt_ref[...].astype(jnp.float32)        # soft targets (gt_score)
    lbl = label_ref[...].astype(jnp.float32)   # 0/1 labels

    # One exponential, reused for both sigmoid and the stable BCE term.
    e = jnp.exp(-x)                            # exp(-x)
    sig = 1.0 / (1.0 + e)                      # sigmoid(x)

    if gamma == 2.0:                           # default path: no float pow
        sig_pow = sig * sig
    elif float(gamma).is_integer() and gamma > 0:
        sig_pow = sig
        for _ in range(int(gamma) - 1):
            sig_pow = sig_pow * sig
    else:
        sig_pow = sig ** gamma                 # fallback (exp + log on EUP)

    # weight = alpha * sigmoid(x)^gamma * (1 - label) + gt_score * label
    weight = alpha * sig_pow * (1.0 - lbl) + z * lbl

    # Numerically-stable BCE-with-logits (reduction='none'):
    #   max(x, 0) - x*z + log1p(exp(-|x|)),  exp(-|x|) reuses e = exp(-x).
    exp_neg_abs = jnp.where(x >= 0.0, e, 1.0 / e)
    bce = jnp.maximum(x, 0.0) - x * z + jnp.log1p(exp_neg_abs)

    vals = bce * weight                        # (tile_rows, 128)
    t = vals.shape[0]
    # VPU-only partial reduction: fold sublane groups of 8 rows onto one
    # (8, 128) vreg.  The expensive cross-lane reduce happens once, outside.
    out_ref[...] = jnp.sum(
        vals.reshape(t // _SUBLANES, _SUBLANES, _LANES), axis=0)


def _round_up(x, m):
    return ((x + m - 1) // m) * m


def varifocal_loss(pred_score, gt_score, label, alpha=0.75, gamma=2.0,
                   max_tile_rows=2048):
    """Pallas TPU varifocal loss: ((BCE(pred, gt) * weight).mean(1)).sum()."""
    B, A, C = pred_score.shape
    n = B * A * C

    # ---- lane-dense flattening: (B, A, C) -> (rows, 128), padded ----
    rows = pl.cdiv(n, _LANES)
    rows8 = _round_up(rows, _SUBLANES)
    num_tiles = pl.cdiv(rows8, max_tile_rows)
    tile_rows = _round_up(pl.cdiv(rows8, num_tiles), _SUBLANES)
    rows_pad = num_tiles * tile_rows
    n_pad = rows_pad * _LANES
    pad = n_pad - n

    def _flat(a, pad_value):
        a = jnp.ravel(a).astype(jnp.float32)
        if pad:
            a = jnp.pad(a, (0, pad), constant_values=pad_value)
        return a.reshape(rows_pad, _LANES)

    # Padding chosen so padded elements contribute exactly zero:
    #   label = 1, gt = 0  =>  weight = gt * label = 0  =>  bce * weight = 0.
    pred_f = _flat(pred_score, 0.0)
    gt_f = _flat(gt_score, 0.0)
    lbl_f = _flat(label, 1.0)

    kernel = functools.partial(_vfl_partial_kernel, alpha=alpha, gamma=gamma)

    in_blk = pl.BlockSpec((tile_rows, _LANES), lambda i: (i, 0))
    out_blk = pl.BlockSpec((_SUBLANES, _LANES), lambda i: (i, 0))

    partials = pl.pallas_call(
        kernel,
        out_shape=jax.ShapeDtypeStruct((num_tiles * _SUBLANES, _LANES),
                                       jnp.float32),
        grid=(num_tiles,),
        in_specs=[in_blk, in_blk, in_blk],
        out_specs=out_blk,
        compiler_params=pltpu.CompilerParams(
            dimension_semantics=("parallel",)),   # megacore-shardable (v7x)
    )(pred_f, gt_f, lbl_f)

    # .mean(1).sum()  ==  sum(all) / A ; the final reduce is tiny (XLA).
    return jnp.sum(partials) / jnp.float32(A)


def _reference(pred_score, gt_score, label, alpha=0.75, gamma=2.0):
    sig = jax.nn.sigmoid(pred_score)
    weight = alpha * sig ** gamma * (1.0 - label) + gt_score * label
    x, z = pred_score, gt_score
    bce = jnp.maximum(x, 0.0) - x * z + jnp.log1p(jnp.exp(-jnp.abs(x)))
    return (bce * weight).mean(1).sum()


if __name__ == "__main__":
    key = jax.random.PRNGKey(0)

    # Case 1: typical detection-head-like shape (lane count a multiple of 128
    # after flattening).
    k1, k2, k3, k4, k5, k6 = jax.random.split(key, 6)
    B, A, C = 2, 128, 16
    pred_score = jax.random.normal(k1, (B, A, C), dtype=jnp.float32) * 2.0
    gt_score = jax.random.uniform(k2, (B, A, C), dtype=jnp.float32)
    label = (jax.random.uniform(k3, (B, A, C)) > 0.8).astype(jnp.float32)

    loss = jax.block_until_ready(varifocal_loss(pred_score, gt_score, label))
    ref = _reference(pred_score, gt_score, label)
    assert jnp.allclose(loss, ref, rtol=1e-4, atol=1e-4), (loss, ref)

    # Case 2: ragged size (exercises the zero-contribution padding path).
    B2, A2, C2 = 2, 60, 20
    p2 = jax.random.normal(k4, (B2, A2, C2), dtype=jnp.float32) * 2.0
    g2 = jax.random.uniform(k5, (B2, A2, C2), dtype=jnp.float32)
    l2 = (jax.random.uniform(k6, (B2, A2, C2)) > 0.8).astype(jnp.float32)

    loss2 = jax.block_until_ready(varifocal_loss(p2, g2, l2))
    ref2 = _reference(p2, g2, l2)
    assert jnp.allclose(loss2, ref2, rtol=1e-4, atol=1e-4), (loss2, ref2)

    print("KERNEL_OK")
</pallas_src>

<mosaic_0001>
module attributes {stable_mosaic.version = 11 : i64} {
  func.func @_vfl_partial_kernel(%arg0: i32, %arg1: memref<32x128xf32, #tpu.memory_space<vmem>>, %arg2: memref<32x128xf32, #tpu.memory_space<vmem>>, %arg3: memref<32x128xf32, #tpu.memory_space<vmem>>, %arg4: memref<8x128xf32, #tpu.memory_space<vmem>>) attributes {dimension_semantics = [#tpu.dimension_semantics<parallel>], iteration_bounds = array<i64: 1>, scalar_prefetch = 0 : i64, scratch_operands = 0 : i64, tpu.core_type = #tpu.core_type<tc>, window_params = [{transform_indices = @transform_0, window_bounds = array<i64: 32, 128>}, {transform_indices = @transform_1, window_bounds = array<i64: 32, 128>}, {transform_indices = @transform_2, window_bounds = array<i64: 32, 128>}, {transform_indices = @transform_3, window_bounds = array<i64: 8, 128>}]} {
    %c0 = arith.constant 0 : index
    %c0_0 = arith.constant 0 : index
    %0 = vector.load %arg1[%c0, %c0_0] : memref<32x128xf32, #tpu.memory_space<vmem>>, vector<32x128xf32>
    %c0_1 = arith.constant 0 : index
    %c0_2 = arith.constant 0 : index
    %1 = vector.load %arg2[%c0_1, %c0_2] : memref<32x128xf32, #tpu.memory_space<vmem>>, vector<32x128xf32>
    %c0_3 = arith.constant 0 : index
    %c0_4 = arith.constant 0 : index
    %2 = vector.load %arg3[%c0_3, %c0_4] : memref<32x128xf32, #tpu.memory_space<vmem>>, vector<32x128xf32>
    %cst = arith.constant 0.000000e+00 : f32
    %3 = vector.broadcast %cst : f32 to vector<32x128xf32>
    %4 = arith.subf %3, %0 : vector<32x128xf32>
    %5 = math.exp %4 : vector<32x128xf32>
    %cst_5 = arith.constant 1.000000e+00 : f32
    %6 = vector.broadcast %cst_5 : f32 to vector<32x128xf32>
    %7 = arith.addf %6, %5 : vector<32x128xf32>
    %cst_6 = arith.constant 1.000000e+00 : f32
    %8 = vector.broadcast %cst_6 : f32 to vector<32x128xf32>
    %9 = arith.divf %8, %7 : vector<32x128xf32>
    %10 = arith.mulf %9, %9 : vector<32x128xf32>
    %cst_7 = arith.constant 7.500000e-01 : f32
    %11 = vector.broadcast %cst_7 : f32 to vector<32x128xf32>
    %12 = arith.mulf %11, %10 : vector<32x128xf32>
    %cst_8 = arith.constant 1.000000e+00 : f32
    %13 = vector.broadcast %cst_8 : f32 to vector<32x128xf32>
    %14 = arith.subf %13, %2 : vector<32x128xf32>
    %15 = arith.mulf %12, %14 : vector<32x128xf32>
    %16 = arith.mulf %1, %2 : vector<32x128xf32>
    %17 = arith.addf %15, %16 : vector<32x128xf32>
    %cst_9 = arith.constant 0.000000e+00 : f32
    %18 = vector.broadcast %cst_9 : f32 to vector<32x128xf32>
    %19 = arith.cmpf oge, %0, %18 : vector<32x128xf32>
    %cst_10 = arith.constant 1.000000e+00 : f32
    %20 = vector.broadcast %cst_10 : f32 to vector<32x128xf32>
    %21 = arith.divf %20, %5 : vector<32x128xf32>
    %22 = arith.select %19, %5, %21 : vector<32x128xi1>, vector<32x128xf32>
    %cst_11 = arith.constant 0.000000e+00 : f32
    %23 = vector.broadcast %cst_11 : f32 to vector<32x128xf32>
    %24 = arith.maximumf %0, %23 : vector<32x128xf32>
    %25 = arith.mulf %0, %1 : vector<32x128xf32>
    %26 = arith.subf %24, %25 : vector<32x128xf32>
    %27 = math.log1p %22 : vector<32x128xf32>
    %28 = arith.addf %26, %27 : vector<32x128xf32>
    %29 = arith.mulf %28, %17 : vector<32x128xf32>
    %30 = vector.shape_cast %29 : vector<32x128xf32> to vector<4x8x128xf32>
    %cst_12 = arith.constant dense<0.000000e+00> : vector<8x128xf32>
    %31 = vector.multi_reduction <add>, %30, %cst_12 [0] : vector<4x8x128xf32> to vector<8x128xf32>
    %c0_13 = arith.constant 0 : index
    %c0_14 = arith.constant 0 : index
    %32 = vector.load %arg4[%c0_13, %c0_14] : memref<8x128xf32, #tpu.memory_space<vmem>>, vector<8x128xf32>
    tpu.vector_store %arg4[%c0_13, %c0_14], %31 {strides = array<i32>} : memref<8x128xf32, #tpu.memory_space<vmem>>, vector<8x128xf32>,
    return
  }
  func.func @transform_0(%arg0: i32) -> (i32, i32) {
    %c0_i32 = arith.constant 0 : i32
    %c0_i32_0 = arith.constant 0 : i32
    return %arg0, %c0_i32 : i32, i32
  }
  func.func @transform_1(%arg0: i32) -> (i32, i32) {
    %c0_i32 = arith.constant 0 : i32
    %c0_i32_0 = arith.constant 0 : i32
    return %arg0, %c0_i32 : i32, i32
  }
  func.func @transform_2(%arg0: i32) -> (i32, i32) {
    %c0_i32 = arith.constant 0 : i32
    %c0_i32_0 = arith.constant 0 : i32
    return %arg0, %c0_i32 : i32, i32
  }
  func.func @transform_3(%arg0: i32) -> (i32, i32) {
    %c0_i32 = arith.constant 0 : i32
    %c0_i32_0 = arith.constant 0 : i32
    return %arg0, %c0_i32 : i32, i32
  }
}

</mosaic_0001>

<bundles_post_ra>
// kernel: tpu_custom_call.1
= control target key start
LH: loop header
LB: loop body
LE: loop exit
PB: predicated region body
PF: predicated region fallthrough
CT: control target
= control target key end

     0   :  { %8 = vsyncpa [#allocation3], 0  ;;  %s484_s0 = inlined_call_operand.hbm [shape: f32[32,128], index: 0, kind: input, shape index: {}]   ;;  %s485_s1 = inlined_call_operand.hbm [shape: f32[32,128], index: 1, kind: input, shape index: {}]   ;;  %s486_s2 = inlined_call_operand.hbm [shape: f32[32,128], index: 2, kind: input, shape index: {}]   ;;  %s487_s3 = inlined_call_operand.hbm [shape: f32[8,128], index: 3, kind: output, shape index: {}]  }
   0x1   :  { %9 = vsyncpa [#allocation6], 0 }
   0x2   :  { %10 = vsyncpa [#allocation4], 0  ;;  %s340_s12 = smov [#allocation5]   ;;  %s341_s14 = smov [#allocation2]  }
   0x3   :  { %s28_s13 = sshll.u32 %s340_s12, 4  ;;  %s16_s15 = sshll.u32 %s341_s14, 4  ;;  %s29_s13 = int_to_ptr.vmem [resolvable:$true] %s28_s13  ;;  %s366_s15 = int_to_ptr.vmem [resolvable:$true] %s16_s15 }
   0x4   :  { %s246_s18 = scalar_lea.hbm %s485_s1, 512 }
   0x5   :  { %p247_p0 = scmp.ne.s32.totalorder %s485_s1, %s246_s18  ;;  %p250_p1 = scmp.lt.u32.totalorder %s246_s18, %s485_s1 }
   0x7   :  { %p252_p2 = pnand %p250_p1, %p247_p0 }
   0x9   :  { %255 = shalt.err (!%p252_p2)
}
   0xa   :  { %s256_s23 = scalar_lea.vmem %s29_s13, 512  ;;  %p261_p4 = scmp.lt.s32.totalorder %s29_s13, %s29_s13 }
   0xb   :  { %p257_p3 = scmp.ne.s32.totalorder %s29_s13, %s256_s23  ;;  %p262_p5 = scmp.lt.s32.totalorder %s256_s23, %s256_s23 }
   0xd   :  { %p263_p6 = por %p262_p5, %p261_p4 }
   0xf   :  { %p264_p7 = pnand %p263_p6, %p257_p3 }
  0x11   :  { %267 = shalt.err (!%p264_p7)
}
  0x12   :  { %s342_s24 = smov 128   ;;  %s343_s25 = smov 8  }
  0x13   :  { %34 = dma.hbm_to_vmem [thread:$0]  %s485_s1, 512, %s29_s13, [#allocation6], %s342_s24, %s342_s24, %s343_s25  }
  0x14   :  { %s268_s30 = scalar_lea.hbm %s484_s0, 512 }
  0x15   :  { %p269_p8 = scmp.ne.s32.totalorder %s484_s0, %s268_s30  ;;  %p272_p9 = scmp.lt.u32.totalorder %s268_s30, %s484_s0 }
  0x17   :  { %p274_p10 = pnand %p272_p9, %p269_p8 }
  0x19   :  { %277 = shalt.err (!%p274_p10)
}
  0x1a   :  { %s278_s8 = scalar_lea.vmem %s366_s15, 512  ;;  %p283_p12 = scmp.lt.s32.totalorder %s366_s15, %s366_s15 }
  0x1b   :  { %p279_p11 = scmp.ne.s32.totalorder %s366_s15, %s278_s8  ;;  %p284_p13 = scmp.lt.s32.totalorder %s278_s8, %s278_s8 }
  0x1d   :  { %p285_p0 = por %p284_p13, %p283_p12 }
  0x1f   :  { %p286_p1 = pnand %p285_p0, %p279_p11 }
  0x21   :  { %289 = shalt.err (!%p286_p1)
}
  0x22   :  { %22 = dma.hbm_to_vmem [thread:$0]  %s484_s0, 512, %s366_s15, [#allocation3], %s342_s24, %s342_s24, %s343_s25  }
  0x23   :  { %s344_s10 = smov [#allocation7]   ;;  %s290_s14 = scalar_lea.hbm %s486_s2, 512 }
  0x24   :  { %s40_s11 = sshll.u32 %s344_s10, 4  ;;  %p291_p2 = scmp.ne.s32.totalorder %s486_s2, %s290_s14  ;;  %s41_s11 = int_to_ptr.vmem [resolvable:$true] %s40_s11 }
  0x25   :  { %p294_p3 = scmp.lt.u32.totalorder %s290_s14, %s486_s2 }
  0x27   :  { %p296_p4 = pnand %p294_p3, %p291_p2 }
  0x29   :  { %299 = shalt.err (!%p296_p4)
}
  0x2a   :  { %s300_s20 = scalar_lea.vmem %s41_s11, 512  ;;  %p305_p6 = scmp.lt.s32.totalorder %s41_s11, %s41_s11 }
  0x2b   :  { %p301_p5 = scmp.ne.s32.totalorder %s41_s11, %s300_s20  ;;  %p306_p7 = scmp.lt.s32.totalorder %s300_s20, %s300_s20 }
  0x2d   :  { %p307_p8 = por %p306_p7, %p305_p6 }
  0x2f   :  { %p308_p9 = pnand %p307_p8, %p301_p5 }
  0x31   :  { %311 = shalt.err (!%p308_p9)
}
  0x32   :  { %46 = dma.hbm_to_vmem [thread:$0]  %s486_s2, 512, %s41_s11, [#allocation6], %s342_s24, %s342_s24, %s343_s25  }
  0x33   :  { %334 = dma.done.wait [#allocation3], 512  }
  0x34   :  { %335 = vsyncadd [#allocation3], 4294966784 }
  0x35   :  { %336 = dma.done.wait [#allocation6], 1024  }
  0x36   :  { %337 = vsyncadd [#allocation6], 4294966272  ;;  %v418_v0 = vld [vmem:[#allocation2] sm:$0xff]  ;;  %v420_v1 = vld [vmem:[#allocation2 + $0x8] sm:$0xff]  ;;  %s345_s2 = smov [#allocation8]  }
  0x37   :  { %v422_v2 = vld [vmem:[#allocation2 + $0x10] sm:$0xff]  ;;  %v424_v3 = vld [vmem:[#allocation2 + $0x18] sm:$0xff]  ;;  %v68_v4 = vsub.f32 0.0, %v418_v0  ;;  %v69_v5 = vsub.f32 0.0, %v420_v1  ;;  %vm116_vm0 = vcmp.ge.f32.partialorder %v418_v0, 0.0  ;;  %vm117_vm1 = vcmp.ge.f32.partialorder %v420_v1, 0.0 }
  0x38   :  { %v70_v6 = vsub.f32 0.0, %v422_v2  ;;  %v71_v7 = vsub.f32 0.0, %v424_v3  ;;  %v60_v21 = vld [vmem:[#allocation5] sm:$0xff]  ;;  %v61_v29 = vld [vmem:[#allocation5 + $0x8] sm:$0xff]  ;;  %v436_v33 = vld [vmem:[#allocation7 + $0x10] sm:$0xff]  ;;  %vm118_vm2 = vcmp.ge.f32.partialorder %v422_v2, 0.0 }
  0x39   :  { %v72_v8 = vmul.f32 1.442695, %v68_v4  ;;  %v74_v9 = vmul.f32 1.442695, %v69_v5  ;;  %v64_v23 = vld [vmem:[#allocation7] sm:$0xff]  ;;  %v136_v30 = vmul.f32 %v60_v21, %v418_v0  ;;  %v65_v32 = vld [vmem:[#allocation7 + $0x8] sm:$0xff]  ;;  %v137_v43 = vmul.f32 %v61_v29, %v420_v1 }
  0x3a   :  { %v76_v10 = vmul.f32 1.442695, %v70_v6  ;;  %v78_v11 = vmul.f32 1.442695, %v71_v7  ;;  %v438_v34 = vld [vmem:[#allocation7 + $0x18] sm:$0xff]  ;;  %v100_v36 = vsub.f32 1.0, %v64_v23  ;;  %v108_v41 = vmul.f32 %v64_v23, %v60_v21 }
  0x3b   :  { %214 = vpow2.f32 %v72_v8  ;;  %vm119_vm3 = vcmp.ge.f32.partialorder %v424_v3, 0.0  ;;  %v109_v42 = vmul.f32 %v65_v32, %v61_v29  ;;  %v62_v46 = vld [vmem:[#allocation5 + $0x10] sm:$0xff]  ;;  %v101_v47 = vsub.f32 1.0, %v65_v32  ;;  %s198_s21 = sshll.u32 %s345_s2, 4  ;;  %s199_s21 = int_to_ptr.vmem [resolvable:$true] %s198_s21 }
  0x3c   :  { %216 = vpow2.f32 %v74_v9  ;;  %v102_v48 = vsub.f32 1.0, %v436_v33  ;;  %v103_v49 = vsub.f32 1.0, %v438_v34  ;;  %v110_v52 = vmul.f32 %v436_v33, %v62_v46  ;;  %s312_s22 = scalar_lea.vmem %s199_s21, 128  ;;  %p317_p11 = scmp.lt.s32.totalorder %s199_s21, %s199_s21 }
  0x3d   :  { %218 = vpow2.f32 %v76_v10  ;;  %v132_v57 = vmax.f32 %v418_v0, 0.0  ;;  %v133_v63 = vmax.f32 %v420_v1, 0.0  ;;  %v134_v4 = vmax.f32 %v422_v2, 0.0  ;;  %p313_p10 = scmp.ne.s32.totalorder %s199_s21, %s312_s22  ;;  %p318_p12 = scmp.lt.s32.totalorder %s312_s22, %s312_s22 }
  0x3e   :  { %220 = vpow2.f32 %v78_v11  ;;  %v135_v9 = vmax.f32 %v424_v3, 0.0  ;;  %v138_v0 = vmul.f32 %v62_v46, %v422_v2 }
  0x3f   :  { %p319_p13 = por %p318_p12, %p317_p11 }
  0x41   :  { %p320_p0 = pnand %p319_p13, %p313_p10 }
  0x45   :  { %v215_v12 = vpop.eup %214 }
  0x46   :  { %v217_v13 = vpop.eup %216  ;;  %v80_v14 = vadd.f32 1.0, %v215_v12  ;;  %222 = vrcp.f32 %v215_v12 }
  0x47   :  { %v219_v15 = vpop.eup %218  ;;  %v81_v16 = vadd.f32 1.0, %v217_v13  ;;  %224 = vrcp.f32 %v217_v13 }
  0x48   :  { %v82_v17 = vadd.f32 1.0, %v219_v15  ;;  %226 = vrcp.f32 %v80_v14  ;;  %v221_v18 = vpop.eup %220  ;;  %v63_v14 = vld [vmem:[#allocation5 + $0x18] sm:$0xff] }
  0x49   :  { %228 = vrcp.f32 %v81_v16  ;;  %v83_v19 = vadd.f32 1.0, %v221_v18  ;;  %v140_v16 = vsub.f32 %v132_v57, %v136_v30 }
  0x4a   :  { %230 = vrcp.f32 %v82_v17 }
  0x4b   :  { %232 = vrcp.f32 %v219_v15 }
  0x4c   :  { %234 = vrcp.f32 %v221_v18 }
  0x4d   :  { %236 = vrcp.f32 %v83_v19  ;;  %v141_v19 = vsub.f32 %v133_v63, %v137_v43 }
  0x50   :  { %v223_v20 = vpop.eup %222 }
  0x51   :  { %v225_v22 = vpop.eup %224  ;;  %v128_v24 = vsel %vm116_vm0, %v215_v12, %v223_v20 }
  0x52   :  { %v227_v25 = vpop.eup %226  ;;  %v432_v26 = vsel %vm117_vm1, %v217_v13, %v225_v22  ;;  %v144_v27 = vadd.f32 1.0, %v128_v24  ;;  %v147_v39 = vmul.f32 -0.5, %v128_v24  ;;  %v150_v59 = vand.u32 2147483647, %v128_v24 }
  0x53   :  { %v229_v28 = vpop.eup %228  ;;  %v153_v31 = vadd.f32 1.0, %v432_v26  ;;  %v92_v35 = vmul.f32 %v227_v25, %v227_v25  ;;  %v156_v44 = vmul.f32 -0.5, %v432_v26  ;;  %v159_v5 = vand.u32 2147483647, %v432_v26 }
  0x54   :  { %238 = vlog2.f32 %v144_v27  ;;  %v231_v37 = vpop.eup %230  ;;  %v93_v38 = vmul.f32 %v229_v28, %v229_v28  ;;  %v148_v58 = vadd.f32 1.0, %v147_v39  ;;  %vm457_vm4 = vcmp.lt.f32.partialorder %v150_v59, 0.0004427343 }
  0x55   :  { %240 = vlog2.f32 %v153_v31  ;;  %v233_v40 = vpop.eup %232  ;;  %v96_v51 = vmul.f32 0.75, %v92_v35  ;;  %v94_v60 = vmul.f32 %v231_v37, %v231_v37  ;;  %v157_v61 = vadd.f32 1.0, %v156_v44 }
  0x56   :  { %v235_v45 = vpop.eup %234  ;;  %v130_v50 = vsel %vm118_vm2, %v219_v15, %v233_v40  ;;  %v97_v56 = vmul.f32 0.75, %v93_v38  ;;  %v149_v11 = vmul.f32 %v148_v58, %v128_v24  ;;  %vm462_vm5 = vcmp.lt.f32.partialorder %v159_v5, 0.0004427343 }
  0x57   :  { %v131_v53 = vsel %vm119_vm3, %v221_v18, %v235_v45  ;;  %v162_v54 = vadd.f32 1.0, %v130_v50  ;;  %v237_v55 = vpop.eup %236  ;;  %v165_v6 = vmul.f32 -0.5, %v130_v50  ;;  %v104_v8 = vmul.f32 %v100_v36, %v96_v51 }
  0x58   :  { %v171_v62 = vadd.f32 1.0, %v131_v53  ;;  %v95_v7 = vmul.f32 %v237_v55, %v237_v55  ;;  %v105_v10 = vmul.f32 %v101_v47, %v97_v56  ;;  %v174_v12 = vmul.f32 -0.5, %v131_v53 }
  0x59   :  { %242 = vlog2.f32 %v162_v54  ;;  %v98_v15 = vmul.f32 0.75, %v94_v60  ;;  %v158_v17 = vmul.f32 %v157_v61, %v432_v26  ;;  %v166_v2 = vadd.f32 1.0, %v165_v6 }
  0x5a   :  { %244 = vlog2.f32 %v171_v62  ;;  %v99_v22 = vmul.f32 0.75, %v95_v7  ;;  %v112_v23 = vadd.f32 %v108_v41, %v104_v8  ;;  %v168_v25 = vand.u32 2147483647, %v130_v50 }
  0x5b   :  { %v113_v27 = vadd.f32 %v109_v42, %v105_v10  ;;  %v139_v28 = vmul.f32 %v63_v14, %v424_v3  ;;  %v175_v30 = vadd.f32 1.0, %v174_v12  ;;  %v106_v26 = vmul.f32 %v102_v48, %v98_v15 }
  0x5c   :  { %v177_v32 = vand.u32 2147483647, %v131_v53  ;;  %v111_v35 = vmul.f32 %v438_v34, %v63_v14  ;;  %v167_v36 = vmul.f32 %v166_v2, %v130_v50  ;;  %v107_v39 = vmul.f32 %v103_v49, %v99_v22 }
  0x5d   :  { %v142_v40 = vsub.f32 %v134_v4, %v138_v0  ;;  %vm169_vm6 = vcmp.lt.f32.partialorder %v168_v25, 0.0004427343  ;;  %v176_v42 = vmul.f32 %v175_v30, %v131_v53  ;;  %v114_v45 = vadd.f32 %v110_v52, %v106_v26 }
  0x5e   :  { %v239_v13 = vpop.eup %238  ;;  %v143_v46 = vsub.f32 %v135_v9, %v139_v28  ;;  %vm178_vm7 = vcmp.lt.f32.partialorder %v177_v32, 0.0004427343  ;;  %v115_v51 = vadd.f32 %v111_v35, %v107_v39 }
  0x5f   :  { %v241_v18 = vpop.eup %240  ;;  %v146_v20 = vmul.f32 0.6931472, %v239_v13 }
  0x60   :  { %v155_v24 = vmul.f32 0.6931472, %v241_v18 }
  0x61   :  { %v152_v29 = vsel %vm457_vm4, %v149_v11, %v146_v20 }
  0x62   :  { %v161_v31 = vsel %vm462_vm5, %v158_v17, %v155_v24  ;;  %v180_v33 = vadd.f32 %v152_v29, %v140_v16 }
  0x63   :  { %v181_v37 = vadd.f32 %v161_v31, %v141_v19  ;;  %v243_v38 = vpop.eup %242 }
  0x64   :  { %v184_v41 = vmul.f32 %v180_v33, %v112_v23  ;;  %v164_v3 = vmul.f32 0.6931472, %v243_v38  ;;  %v245_v44 = vpop.eup %244 }
  0x65   :  { %v185_v43 = vmul.f32 %v181_v37, %v113_v27  ;;  %v173_v48 = vmul.f32 0.6931472, %v245_v44 }
  0x66   :  { %v170_v47 = vsel %vm169_vm6, %v167_v36, %v164_v3 }
  0x67   :  { %v182_v54 = vadd.f32 %v170_v47, %v142_v40  ;;  %v188_v55 = vadd.f32 %v185_v43, %v184_v41  ;;  %v179_v34 = vsel %vm178_vm7, %v176_v42, %v173_v48 }
  0x68   :  { %v183_v50 = vadd.f32 %v179_v34, %v143_v46 }
  0x69   :  { %v186_v56 = vmul.f32 %v182_v54, %v114_v45 }
  0x6a   :  { %v187_v49 = vmul.f32 %v183_v50, %v115_v51 }
  0x6b   :  { %v189_v57 = vadd.f32 %v188_v55, %v186_v56 }
  0x6d   :  { %v190_v58 = vadd.f32 %v189_v57, %v187_v49 }
  0x6f   :  { %191 = vst [vmem:[#allocation8] sm:$0xff] %v190_v58 }
  0x70   :  { %323 = shalt.err (!%p320_p0)
}
  0x71   :  { %s324_s25 = scalar_lea.hbm %s487_s3, 128 }
  0x72   :  { %p325_p1 = scmp.ne.s32.totalorder %s487_s3, %s324_s25  ;;  %p328_p2 = scmp.lt.u32.totalorder %s324_s25, %s487_s3 }
  0x74   :  { %p330_p3 = pnand %p328_p2, %p325_p1 }
  0x76   :  { %333 = shalt.err (!%p330_p3)
}
  0x77   :  { %201 = dma.vmem_to_hbm [thread:$0]  %s199_s21, 128, %s487_s3, [#allocation4]  }
  0x78   :  { %338 = dma.done.wait [#allocation4], 128  }
  0x79   :  { %339 = vsyncadd [#allocation4], 4294967168 }
  0x7a   :  { %205 = vsyncpa [#allocation3], 1 }
  0x7b   :  { %206 = vsyncpa [#allocation6], 1 }
  0x7c   :  { %207 = vsyncpa [#allocation4], 1 }

</bundles_post_ra>
